<compile_context>
chip_gen: v7x
topology: tpu7x:2x2x1
jax: 0.10.0
libtpu: 0.0.40
codegen_flags: <defaults>
</compile_context>

<pallas_src>
import functools

import jax
import jax.numpy as jnp
import numpy as np
from jax.experimental import pallas as pl
from jax.experimental.pallas import tpu as pltpu

EPS = 1e-5
_TILE = 16 * 1024                    # default pixels per tile (multiple of 128)
_CACHE_BUDGET = 12 * 1024 * 1024     # max padded bytes for the persistent y cache
_VMEM_LIMIT = 32 * 1024 * 1024


def _fused_kernel(params_ref, x_ref, w_ref, out_ref, sum_ref, ssq_ref,
                  ycache_ref=None, *, n_pixels, tile, num_tiles, eps, use_cache):
    """Two-phase fused 1x1-conv x2 + BatchNorm(train) + ReLU + add.

    params_ref : SMEM f32[4] = [b1, b2, gamma, beta]
    x_ref      : VMEM f32[C, tile]   channels on sublanes, pixels on lanes
    w_ref      : VMEM f32[2, C]      row 0 = conv1 weight, row 1 = conv2 weight
    out_ref    : VMEM f32[1, tile]
    sum_ref    : VMEM f32[1, 1]      running sum of conv2 output
    ssq_ref    : VMEM f32[1, 1]      running sum of squares of conv2 output
    ycache_ref : VMEM f32[num_tiles, 2, tile] (only when use_cache)
    """
    phase = pl.program_id(0)
    t = pl.program_id(1)
    has_partial = (n_pixels % tile) != 0

    @pl.when(jnp.logical_and(phase == 0, t == 0))
    def _():
        sum_ref[...] = jnp.zeros_like(sum_ref)
        ssq_ref[...] = jnp.zeros_like(ssq_ref)

    b2 = params_ref[1]

    @pl.when(phase == 0)
    def _():
        # Both 1x1 convolutions as a single small MXU matmul.
        y = jnp.dot(w_ref[...], x_ref[...],
                    preferred_element_type=jnp.float32)          # (2, tile)
        if use_cache:
            ycache_ref[t] = y                                     # persist for phase 1
        x2 = y[1:2, :] + b2                                       # conv2 output

        def _acc(vals):
            sum_ref[...] += jnp.sum(vals, keepdims=True)
            ssq_ref[...] += jnp.sum(vals * vals, keepdims=True)

        if has_partial:
            # Only the last tile needs lane masking; full tiles stay unmasked.
            @pl.when(t != num_tiles - 1)
            def _():
                _acc(x2)

            @pl.when(t == num_tiles - 1)
            def _():
                col = jax.lax.broadcasted_iota(jnp.int32, x2.shape, 1) + t * tile
                _acc(jnp.where(col < n_pixels, x2, 0.0))
        else:
            _acc(x2)

    @pl.when(phase == 1)
    def _():
        if use_cache:
            y = ycache_ref[t]                                     # no x re-read
        else:
            y = jnp.dot(w_ref[...], x_ref[...],
                        preferred_element_type=jnp.float32)
        b1 = params_ref[0]
        gamma = params_ref[2]
        beta = params_ref[3]
        x1 = y[0:1, :] + b1                                       # conv1 output
        x2 = y[1:2, :] + b2                                       # conv2 output

        inv_n = 1.0 / float(n_pixels)                             # compile-time
        mean = sum_ref[...] * inv_n                               # (1, 1)
        var = ssq_ref[...] * inv_n - mean * mean                  # biased variance
        inv_std = jax.lax.rsqrt(var + eps)
        scale = gamma * inv_std
        shift = beta - mean * scale
        out_ref[...] = x1 + jnp.maximum(scale * x2 + shift, 0.0)  # BN + ReLU + add


def model_forward(x_nchw, w1, b1, w2, b2, gamma, beta, eps=EPS,
                  tile_pixels=None, max_cache_bytes=_CACHE_BUDGET):
    """x_nchw: f32[N, C, H, W] -> f32[N, 1, H, W]."""
    N, C, H, W = x_nchw.shape
    P = N * H * W

    # Channels on sublanes, pixels on lanes.  For N == 1 (the module's case)
    # this is a pure, free reshape of the NCHW layout.
    if N == 1:
        x_cp = x_nchw.reshape(C, P)
    else:
        x_cp = jnp.transpose(x_nchw, (1, 0, 2, 3)).reshape(C, P)
    x_cp = x_cp.astype(jnp.float32)

    w = jnp.stack([jnp.reshape(w1, (C,)), jnp.reshape(w2, (C,))],
                  axis=0).astype(jnp.float32)                       # (2, C)
    params = jnp.asarray([b1, b2, gamma, beta], dtype=jnp.float32)  # (4,) -> SMEM

    max_tile = _TILE if tile_pixels is None else int(tile_pixels)
    if P <= max_tile:
        tile = P
    else:
        tile = max((max_tile // 128) * 128, 128)   # lane dim multiple of 128
    num_tiles = pl.cdiv(P, tile)

    # Persistent y-cache footprint: the (2, tile) rows pad to 8 sublanes per
    # tile, so it costs 32 bytes/pixel.  12 MiB cap keeps this well inside
    # v7x's 64 MiB physical / 32 MiB scoped VMEM (and is trivially fine on
    # v5e / v6e).  Beyond the cap we fall back to re-reading x in phase 1.
    cache_bytes = num_tiles * 8 * tile * 4
    use_cache = cache_bytes <= max_cache_bytes

    kernel = functools.partial(_fused_kernel, n_pixels=P, tile=tile,
                               num_tiles=num_tiles, eps=float(eps),
                               use_cache=use_cache)

    scratch = [pltpu.VMEM((1, 1), jnp.float32),   # sum(x2)
               pltpu.VMEM((1, 1), jnp.float32)]   # sum(x2^2)
    if use_cache:
        scratch.append(pltpu.VMEM((num_tiles, 2, tile), jnp.float32))

    if use_cache:
        # Phase 1 never needs x: pin it to the already-resident block 0.
        x_index_map = lambda p, t: (0, t * (1 - p))
    else:
        x_index_map = lambda p, t: (0, t)

    out = pl.pallas_call(
        kernel,
        out_shape=jax.ShapeDtypeStruct((1, P), jnp.float32),
        grid_spec=pltpu.PrefetchScalarGridSpec(
            num_scalar_prefetch=0,
            grid=(2, num_tiles),                      # (phase, pixel tile)
            in_specs=[
                pl.BlockSpec(memory_space=pltpu.MemorySpace.SMEM),  # params (4,)
                pl.BlockSpec((C, tile), x_index_map),               # x (C, P)
                pl.BlockSpec((2, C), lambda p, t: (0, 0)),          # stacked weights
            ],
            # Phase 0 never writes the output: pin its block to (0, 0) so no
            # uninitialized block is written back to HBM before phase 1.
            out_specs=pl.BlockSpec((1, tile), lambda p, t: (0, t * p)),
            scratch_shapes=scratch,
        ),
        compiler_params=pltpu.CompilerParams(
            # Both axes sequential: the phase axis carries BN stats and the
            # tile axis accumulates into shared scratch (see v7x TODO above).
            dimension_semantics=("arbitrary", "arbitrary"),
            vmem_limit_bytes=_VMEM_LIMIT,
        ),
    )(params, x_cp, w)

    # (1, N*H*W) -> (N, 1, H, W) is a pure reshape (out-channel dim is 1).
    return out.reshape(N, 1, H, W)


def _reference(x, w1, b1, w2, b2, gamma, beta, eps=EPS):
    # Pure-JAX reference (elementwise mul + channel sum so it stays exact f32).
    x1 = jnp.sum(x * w1[None, :, None, None], axis=1, keepdims=True) + b1
    x2 = jnp.sum(x * w2[None, :, None, None], axis=1, keepdims=True) + b2
    mean = jnp.mean(x2)
    var = jnp.mean((x2 - mean) ** 2)
    x3 = jnp.maximum(gamma * (x2 - mean) / jnp.sqrt(var + eps) + beta, 0.0)
    return x1 + x3


if __name__ == "__main__":
    key = jax.random.PRNGKey(0)
    k_x, k_w1, k_b1, k_w2, k_b2, k_x2 = jax.random.split(key, 6)

    C = 16
    # Deterministic parameter init mimicking PyTorch Conv2d default
    # (uniform in +/- 1/sqrt(fan_in), fan_in = C * 1 * 1).
    bound = 1.0 / (C ** 0.5)
    w1 = jax.random.uniform(k_w1, (C,), jnp.float32, -bound, bound)
    b1 = float(jax.random.uniform(k_b1, (), jnp.float32, -bound, bound))
    w2 = jax.random.uniform(k_w2, (C,), jnp.float32, -bound, bound)
    b2 = float(jax.random.uniform(k_b2, (), jnp.float32, -bound, bound))
    gamma, beta = 1.0, 0.0   # BatchNorm2d default affine params

    # Shape from the original module: x = torch.randn(1, 16, 2, 2)
    x_small = jax.random.normal(k_x, (1, C, 2, 2), dtype=jnp.float32)
    # Second small shape exercising multi-tile + partial-tile masking
    # (P = 29 * 37 = 1073; with a 256-pixel tile override -> 5 tiles, last partial).
    x_mid = jax.random.normal(k_x2, (1, C, 29, 37), dtype=jnp.float32)

    cases = [
        (x_small, dict()),                                   # single tile, cached y
        (x_mid, dict(tile_pixels=256)),                      # multi-tile + mask, cached y
        (x_mid, dict(tile_pixels=256, max_cache_bytes=0)),   # fallback: re-read x
    ]
    for x, kw in cases:
        out = model_forward(x, w1, b1, w2, b2, gamma, beta, **kw)
        jax.block_until_ready(out)
        assert out.shape == (x.shape[0], 1, x.shape[2], x.shape[3]), out.shape
        ref = _reference(x, w1, b1, w2, b2, gamma, beta)
        np.testing.assert_allclose(np.asarray(out), np.asarray(ref),
                                   rtol=1e-2, atol=1e-2)

    print("KERNEL_OK")
</pallas_src>

<mosaic_0001>
module attributes {stable_mosaic.version = 11 : i64} {
  func.func @_fused_kernel(%arg0: i32, %arg1: i32, %arg2: memref<4xf32, #tpu.memory_space<smem>>, %arg3: memref<16x4xf32, #tpu.memory_space<vmem>>, %arg4: memref<2x16xf32, #tpu.memory_space<vmem>>, %arg5: memref<1x4xf32, #tpu.memory_space<vmem>>, %arg6: memref<1x1xf32, #tpu.memory_space<vmem>>, %arg7: memref<1x1xf32, #tpu.memory_space<vmem>>, %arg8: memref<1x2x4xf32, #tpu.memory_space<vmem>>) attributes {dimension_semantics = [#tpu.dimension_semantics<arbitrary>, #tpu.dimension_semantics<arbitrary>], iteration_bounds = array<i64: 2, 1>, scalar_prefetch = 0 : i64, scratch_operands = 3 : i64, tpu.core_type = #tpu.core_type<tc>, window_params = [{transform_indices = @transform_0, window_bounds = array<i64: 4>}, {transform_indices = @transform_1, window_bounds = array<i64: 16, 4>}, {pipeline_mode = #tpu.pipeline_mode<synchronous>, transform_indices = @transform_2, window_bounds = array<i64: 2, 16>}, {transform_indices = @transform_3, window_bounds = array<i64: 1, 4>}]} {
    %c0_i32 = arith.constant 0 : i32
    %0 = arith.cmpi eq, %arg0, %c0_i32 : i32
    %c0_i32_0 = arith.constant 0 : i32
    %1 = arith.cmpi eq, %arg1, %c0_i32_0 : i32
    %2 = arith.andi %0, %1 : i1
    %3 = arith.extui %2 : i1 to i32
    %c0_i32_1 = arith.constant 0 : i32
    %4 = arith.cmpi ne, %3, %c0_i32_1 : i32
    scf.if %4 {
      %cst = arith.constant 0.000000e+00 : f32
      %12 = vector.broadcast %cst : f32 to vector<1x1xf32>
      %c0 = arith.constant 0 : index
      %c0_5 = arith.constant 0 : index
      %13 = vector.load %arg6[%c0, %c0_5] : memref<1x1xf32, #tpu.memory_space<vmem>>, vector<1x1xf32>
      tpu.vector_store %arg6[%c0, %c0_5], %12 {strides = array<i32>} : memref<1x1xf32, #tpu.memory_space<vmem>>, vector<1x1xf32>,
      %cst_6 = arith.constant 0.000000e+00 : f32
      %14 = vector.broadcast %cst_6 : f32 to vector<1x1xf32>
      %c0_7 = arith.constant 0 : index
      %c0_8 = arith.constant 0 : index
      %15 = vector.load %arg7[%c0_7, %c0_8] : memref<1x1xf32, #tpu.memory_space<vmem>>, vector<1x1xf32>
      tpu.vector_store %arg7[%c0_7, %c0_8], %14 {strides = array<i32>} : memref<1x1xf32, #tpu.memory_space<vmem>>, vector<1x1xf32>,
    } else {
    }
    %c1 = arith.constant 1 : index
    %5 = memref.load %arg2[%c1] : memref<4xf32, #tpu.memory_space<smem>>
    %c0_i32_2 = arith.constant 0 : i32
    %6 = arith.cmpi eq, %arg0, %c0_i32_2 : i32
    %7 = arith.extui %6 : i1 to i32
    %c0_i32_3 = arith.constant 0 : i32
    %8 = arith.cmpi ne, %7, %c0_i32_3 : i32
    scf.if %8 {
      %c0 = arith.constant 0 : index
      %c0_5 = arith.constant 0 : index
      %12 = vector.load %arg4[%c0, %c0_5] : memref<2x16xf32, #tpu.memory_space<vmem>>, vector<2x16xf32>
      %c0_6 = arith.constant 0 : index
      %c0_7 = arith.constant 0 : index
      %13 = vector.load %arg3[%c0_6, %c0_7] : memref<16x4xf32, #tpu.memory_space<vmem>>, vector<16x4xf32>
      %cst = arith.constant dense<0.000000e+00> : vector<2x4xf32>
      %14 = tpu.matmul %12, %13, %cst {dimension_numbers = #tpu.dot_dimension_numbers<[1], [0], [0], [1], [0, 0, 1, 1], [], []>} : vector<2x16xf32>, vector<16x4xf32>, vector<2x4xf32> -> vector<2x4xf32>
      %15 = arith.index_cast %arg1 : i32 to index
      %c0_8 = arith.constant 0 : index
      %c0_9 = arith.constant 0 : index
      %16 = vector.load %arg8[%15, %c0_8, %c0_9] : memref<1x2x4xf32, #tpu.memory_space<vmem>>, vector<1x2x4xf32>
      %17 = vector.shape_cast %16 : vector<1x2x4xf32> to vector<2x4xf32>
      %18 = vector.shape_cast %14 : vector<2x4xf32> to vector<1x2x4xf32>
      tpu.vector_store %arg8[%15, %c0_8, %c0_9], %18 {strides = array<i32>} : memref<1x2x4xf32, #tpu.memory_space<vmem>>, vector<1x2x4xf32>,
      %19 = vector.extract_strided_slice %14 {offsets = [1, 0], sizes = [1, 4], strides = [1, 1]} : vector<2x4xf32> to vector<1x4xf32>
      %20 = vector.broadcast %5 : f32 to vector<1x4xf32>
      %21 = arith.addf %19, %20 : vector<1x4xf32>
      %c0_10 = arith.constant 0 : index
      %c0_11 = arith.constant 0 : index
      %22 = vector.load %arg6[%c0_10, %c0_11] : memref<1x1xf32, #tpu.memory_space<vmem>>, vector<1x1xf32>
      %23 = vector.shape_cast %21 : vector<1x4xf32> to vector<1x1x4xf32>
      %cst_12 = arith.constant dense<0.000000e+00> : vector<1xf32>
      %24 = vector.multi_reduction <add>, %23, %cst_12 [1, 2] : vector<1x1x4xf32> to vector<1xf32>
      %25 = vector.shape_cast %24 : vector<1xf32> to vector<1x1x1xf32>
      %26 = vector.extract %25[0, 0, 0] : f32 from vector<1x1x1xf32>
      %27 = vector.broadcast %26 : f32 to vector<1x1xf32>
      %28 = arith.addf %22, %27 : vector<1x1xf32>
      %c0_13 = arith.constant 0 : index
      %c0_14 = arith.constant 0 : index
      %29 = vector.load %arg6[%c0_13, %c0_14] : memref<1x1xf32, #tpu.memory_space<vmem>>, vector<1x1xf32>
      tpu.vector_store %arg6[%c0_13, %c0_14], %28 {strides = array<i32>} : memref<1x1xf32, #tpu.memory_space<vmem>>, vector<1x1xf32>,
      %c0_15 = arith.constant 0 : index
      %c0_16 = arith.constant 0 : index
      %30 = vector.load %arg7[%c0_15, %c0_16] : memref<1x1xf32, #tpu.memory_space<vmem>>, vector<1x1xf32>
      %31 = arith.mulf %21, %21 : vector<1x4xf32>
      %32 = vector.shape_cast %31 : vector<1x4xf32> to vector<1x1x4xf32>
      %cst_17 = arith.constant dense<0.000000e+00> : vector<1xf32>
      %33 = vector.multi_reduction <add>, %32, %cst_17 [1, 2] : vector<1x1x4xf32> to vector<1xf32>
      %34 = vector.shape_cast %33 : vector<1xf32> to vector<1x1x1xf32>
      %35 = vector.extract %34[0, 0, 0] : f32 from vector<1x1x1xf32>
      %36 = vector.broadcast %35 : f32 to vector<1x1xf32>
      %37 = arith.addf %30, %36 : vector<1x1xf32>
      %c0_18 = arith.constant 0 : index
      %c0_19 = arith.constant 0 : index
      %38 = vector.load %arg7[%c0_18, %c0_19] : memref<1x1xf32, #tpu.memory_space<vmem>>, vector<1x1xf32>
      tpu.vector_store %arg7[%c0_18, %c0_19], %37 {strides = array<i32>} : memref<1x1xf32, #tpu.memory_space<vmem>>, vector<1x1xf32>,
    } else {
    }
    %c1_i32 = arith.constant 1 : i32
    %9 = arith.cmpi eq, %arg0, %c1_i32 : i32
    %10 = arith.extui %9 : i1 to i32
    %c0_i32_4 = arith.constant 0 : i32
    %11 = arith.cmpi ne, %10, %c0_i32_4 : i32
    scf.if %11 {
      %12 = arith.index_cast %arg1 : i32 to index
      %c0 = arith.constant 0 : index
      %c0_5 = arith.constant 0 : index
      %13 = vector.load %arg8[%12, %c0, %c0_5] : memref<1x2x4xf32, #tpu.memory_space<vmem>>, vector<1x2x4xf32>
      %14 = vector.shape_cast %13 : vector<1x2x4xf32> to vector<2x4xf32>
      %c0_6 = arith.constant 0 : index
      %15 = memref.load %arg2[%c0_6] : memref<4xf32, #tpu.memory_space<smem>>
      %c2 = arith.constant 2 : index
      %16 = memref.load %arg2[%c2] : memref<4xf32, #tpu.memory_space<smem>>
      %c3 = arith.constant 3 : index
      %17 = memref.load %arg2[%c3] : memref<4xf32, #tpu.memory_space<smem>>
      %18 = vector.extract_strided_slice %14 {offsets = [0, 0], sizes = [1, 4], strides = [1, 1]} : vector<2x4xf32> to vector<1x4xf32>
      %19 = vector.broadcast %15 : f32 to vector<1x4xf32>
      %20 = arith.addf %18, %19 : vector<1x4xf32>
      %21 = vector.extract_strided_slice %14 {offsets = [1, 0], sizes = [1, 4], strides = [1, 1]} : vector<2x4xf32> to vector<1x4xf32>
      %22 = vector.broadcast %5 : f32 to vector<1x4xf32>
      %23 = arith.addf %21, %22 : vector<1x4xf32>
      %c0_7 = arith.constant 0 : index
      %c0_8 = arith.constant 0 : index
      %24 = vector.load %arg6[%c0_7, %c0_8] : memref<1x1xf32, #tpu.memory_space<vmem>>, vector<1x1xf32>
      %cst = arith.constant 2.500000e-01 : f32
      %25 = vector.broadcast %cst : f32 to vector<1x1xf32>
      %26 = arith.mulf %24, %25 : vector<1x1xf32>
      %c0_9 = arith.constant 0 : index
      %c0_10 = arith.constant 0 : index
      %27 = vector.load %arg7[%c0_9, %c0_10] : memref<1x1xf32, #tpu.memory_space<vmem>>, vector<1x1xf32>
      %cst_11 = arith.constant 2.500000e-01 : f32
      %28 = vector.broadcast %cst_11 : f32 to vector<1x1xf32>
      %29 = arith.mulf %27, %28 : vector<1x1xf32>
      %30 = arith.mulf %26, %26 : vector<1x1xf32>
      %31 = arith.subf %29, %30 : vector<1x1xf32>
      %cst_12 = arith.constant 9.99999974E-6 : f32
      %32 = vector.broadcast %cst_12 : f32 to vector<1x1xf32>
      %33 = arith.addf %31, %32 : vector<1x1xf32>
      %34 = math.rsqrt %33 : vector<1x1xf32>
      %35 = vector.broadcast %16 : f32 to vector<1x1xf32>
      %36 = arith.mulf %35, %34 : vector<1x1xf32>
      %37 = arith.mulf %26, %36 : vector<1x1xf32>
      %38 = vector.broadcast %17 : f32 to vector<1x1xf32>
      %39 = arith.subf %38, %37 : vector<1x1xf32>
      %40 = vector.broadcast %36 : vector<1x1xf32> to vector<1x4xf32>
      %41 = arith.mulf %40, %23 : vector<1x4xf32>
      %42 = vector.broadcast %39 : vector<1x1xf32> to vector<1x4xf32>
      %43 = arith.addf %41, %42 : vector<1x4xf32>
      %cst_13 = arith.constant 0.000000e+00 : f32
      %44 = vector.broadcast %cst_13 : f32 to vector<1x4xf32>
      %45 = arith.maximumf %43, %44 : vector<1x4xf32>
      %46 = arith.addf %20, %45 : vector<1x4xf32>
      %c0_14 = arith.constant 0 : index
      %c0_15 = arith.constant 0 : index
      %47 = vector.load %arg5[%c0_14, %c0_15] : memref<1x4xf32, #tpu.memory_space<vmem>>, vector<1x4xf32>
      tpu.vector_store %arg5[%c0_14, %c0_15], %46 {strides = array<i32>} : memref<1x4xf32, #tpu.memory_space<vmem>>, vector<1x4xf32>,
    } else {
    }
    return
  }
  func.func @transform_0(%arg0: i32, %arg1: i32) -> i32 {
    %c0_i32 = arith.constant 0 : i32
    %c0_i32_0 = arith.constant 0 : i32
    return %c0_i32 : i32
  }
  func.func @transform_1(%arg0: i32, %arg1: i32) -> (i32, i32) {
    %c1_i32 = arith.constant 1 : i32
    %0 = arith.subi %c1_i32, %arg0 : i32
    %1 = arith.muli %arg1, %0 : i32
    %c0_i32 = arith.constant 0 : i32
    %c0_i32_0 = arith.constant 0 : i32
    return %c0_i32, %1 : i32, i32
  }
  func.func @transform_2(%arg0: i32, %arg1: i32) -> (i32, i32) {
    %c0_i32 = arith.constant 0 : i32
    %c0_i32_0 = arith.constant 0 : i32
    %c0_i32_1 = arith.constant 0 : i32
    return %c0_i32, %c0_i32_0 : i32, i32
  }
  func.func @transform_3(%arg0: i32, %arg1: i32) -> (i32, i32) {
    %0 = arith.muli %arg1, %arg0 : i32
    %c0_i32 = arith.constant 0 : i32
    %c0_i32_0 = arith.constant 0 : i32
    return %c0_i32, %0 : i32, i32
  }
}

</mosaic_0001>

<bundles_post_ra>
// kernel: tpu_custom_call.1
= control target key start
LH: loop header
LB: loop body
LE: loop exit
PB: predicated region body
PF: predicated region fallthrough
CT: control target
= control target key end

     0   :  { %8 = vsyncpa [#allocation7], 0  ;;  %s777_s0 = inlined_call_operand.vmem [shape: f32[4], index: 0, kind: input, shape index: {}]   ;;  %s778_s1 = inlined_call_operand.vmem [shape: f32[16,4], index: 1, kind: input, shape index: {}]   ;;  %s779_s2 = inlined_call_operand.vmem [shape: f32[2,16], index: 2, kind: input, shape index: {}]   ;;  %s780_s3 = inlined_call_operand.hbm [shape: f32[1,4], index: 3, kind: output, shape index: {}]  }
   0x1   :  { %9 = vsyncpa [#allocation6], 0 }
   0x2   :  { %11 = vsyncpa [#allocation6 + $0x1], 0  ;;  %s680_s12 = smov 0   ;;  %s682_s13 = smov 0  }
   0x3   :  { %s684_s14 = smov 0  }
   0x4 LB: > { %s488_s15 = sadd.s32 4294967295, %s651_s14   ;;  %s489_s16 = sadd.s32 4294967294, %s651_s14   ;;  %s651_s14 = sphi %s684_s14, %s17_s14   ;;  %s647_s13 = sphi %s682_s13, %s785_s13   ;;  %s643_s12 = sphi %s680_s12, %s784_s12  }
   0x5   : > { %s29_s17 = sadd.s32 1, %s647_s13  ;;  %p490_p0 = scmp.ge.s32.totalorder %s651_s14, 1 }
   0x6   : > { %p31_p1 = scmp.ge.s32.totalorder %s29_s17, 2  ;;  %p134_p2 = scmp.lt.s32.totalorder %s651_s14, 3 }
   0x7   : > { %p702_p3 = scmp.eq.s32.totalorder %s488_s15, 0  ;;  %s147_s22 = sshll.u32 %s777_s0, 4  ;;  %s148_s22 = int_to_ptr.vmem [resolvable:$true] %s147_s22 }
   0x8   : > { %s787_s17 = smov (%p31_p1, %s29_s17), 0  ;;  %p708_p4 = pnand %p490_p0, %p134_p2 }
   0x9   : > { %s580_s23 = scalar_lea.vmem %s148_s22, 16  ;;  %p588_p11 = scmp.lt.s32.totalorder %s148_s22, %s148_s22 }
   0xa   : > { %p533_p5 = pneg %p708_p4  ;;  %p581_p7 = scmp.ne.s32.totalorder %s148_s22, %s580_s23 }
   0xb   : > { %p589_p12 = scmp.lt.s32.totalorder %s580_s23, %s580_s23 }
   0xc   : > { %p534_p6 = pnand %p702_p3, %p533_p5 }
   0xd   : > { %p590_p13 = por %p589_p12, %p588_p11 }
   0xe   : > { %p582_p8 = pneg %p534_p6 }
  0x10   : > { %p583_p9 = pnand %p582_p8, %p581_p7 }
  0x12   : > { %p584_p10 = pneg %p583_p9 }
  0x14   : > { %p591_p0 = pnand %p590_p13, %p584_p10 }
  0x16   : > { %594 = shalt.err (!%p591_p0)
}
  0x17   : > { %s653_s24 = smov [#allocation5]   ;;  %174 = sbr.rel (%p708_p4) target bundleno = 670 (0x29e), region = 32 }
  0x18   : > { %536 = dma.vmem_to_smem (!%p534_p6), %s148_s22, 16, %s653_s24, [#allocation7]  }
  0x1e   : > { %634 = dma.done.wait (%p702_p3), [#allocation7], 16  }
  0x1f   : > { %636 = vsyncadd (%p702_p3), [#allocation7], 4294967280 }
  0x20   : > { %180 = sfence }
  0x21   : > { %p208_p1 = scmp.eq.s32.totalorder %s643_s12, 0 }
  0x22   : > { %vm214_vm0 = vcmask (%p208_p1), 0   ;;  %v654_v0 = vmov (%p208_p1), 0.0  }
  0x23   : > { %213 = sbr.rel (!%p208_p1) target bundleno = 42 (0x2a), region = 40  ;;  %215 = vst.msk [vmem:[#allocation2] sm:$0x1] (%p208_p1), %vm214_vm0, %v654_v0  ;;  %216 = vst.msk [vmem:[#allocation3] sm:$0x1] (%p208_p1), %vm214_vm0, %v654_v0 }
  0x2a PF: > { %s726_s25 = sld [smem:[#allocation5 + $0x1]]  ;;  %p498_p2 = scmp.ne.s32.totalorder %s643_s12, 0 }
  0x2b   : > { %v222_v1 = vld [vmem:[%s778_s1] sm:$0xff] (!%p498_p2)  ;;  %v223_v2 = vld [vmem:[%s778_s1 + $0x8] sm:$0xff] (!%p498_p2)  ;;  %v655_v3 = vmov (!%p498_p2), 0.0|0.0   ;;  %vm656_vm1 = vmmov (!%p498_p2), 0   ;;  %v657_v5 = vmov (!%p498_p2), 0.0   ;;  %vm224_vm2 = vcmask (!%p498_p2), 130048  }
  0x2c   : > { %220 = sbr.rel (%p498_p2) target bundleno = 478 (0x1de), region = 44  ;;  %518 = vmatprep.subr.bf16.mxu0 (!%p498_p2), %v655_v3  ;;  %v519_v4 = vpack.c.bf16 (!%p498_p2), %v223_v2, %v222_v1  ;;  %515 = vmatprep.mubr.msk.f32.mxu0 (!%p498_p2), %vm656_vm1, %v657_v5  ;;  %v221_v6 = vld [vmem:[%s779_s2] sm:$0x3] (!%p498_p2)  ;;  %vm300_vm3 = vcmask (!%p498_p2), 25600   ;;  %vm308_vm4 = vcmask (!%p498_p2), 24576   ;;  %vm321_vm5 = vcmask (!%p498_p2), 0  }
  0x2d   : > { %v304_v30 = vld [vmem:[#allocation2] sm:$0x1] (!%p498_p2)  ;;  %v323_v33 = vld [vmem:[#allocation3] sm:$0x1] (!%p498_p2) }
  0x2e   : > { %520 = vmatpush3.bf16.msra.mxu0 (!%p498_p2), %v519_v4 }
  0x30   : > { %v302_v7 = vstv (!%p498_p2), %s726_s25 }
  0x31   : > { %516 = vmatmul.mubr.msk.f32.vlgmr.msra.gmra.mrb[0].mxu0 (!%p498_p2), %vm224_vm2, %v221_v6 }
 0x104   : > { %v294_v8 = vpop.f32.mrb[0].mxu0 }
 0x105   : > { %301 = vst.msk [vmem:[#allocation4] sm:$0x3] %vm300_vm3, %v294_v8  ;;  %v303_v9 = vadd.f32 %v302_v7, %v294_v8  ;;  %v517_v10 = vpop.f32.mrb[1].mxu0 }
 0x107   : > { %v306_v11 = vrot.slane %v303_v9, 1  ;;  %v324_v12 = vmul.f32 %v303_v9, %v303_v9 }
 0x109   : > { %v309_v13 = vsel %vm308_vm4, %v306_v11, 0.0  ;;  %v326_v14 = vrot.slane %v324_v12, 1 }
 0x10a   : > { %310 = vadd.xlane.f32.xlu0 %v309_v13 }
 0x10b   : > { %v328_v15 = vsel %vm308_vm4, %v326_v14, 0.0 }
 0x10e   : > { %329 = vadd.xlane.f32.xlu0 %v328_v15 }
 0x197   : > { %v311_v16 = vpop.xlane.xlu0 %310 }
 0x198   : > { %v312_v17 = vrot.slane %v311_v16, 4 }
 0x19a   : > { %v313_v18 = vadd.f32 %v312_v17, %v311_v16 }
 0x19b   : > { %v330_v19 = vpop.xlane.xlu0 %329 }
 0x19c   : > { %v314_v20 = vrot.slane %v313_v18, 2  ;;  %v331_v21 = vrot.slane %v330_v19, 4 }
 0x19e   : > { %v332_v22 = vadd.f32 %v331_v21, %v330_v19  ;;  %v315_v23 = vadd.f32 %v314_v20, %v313_v18 }
 0x1a0   : > { %v333_v24 = vrot.slane %v332_v22, 2  ;;  %v316_v25 = vrot.slane %v315_v23, 1 }
 0x1a2   : > { %v334_v26 = vadd.f32 %v333_v24, %v332_v22  ;;  %v317_v27 = vadd.f32 %v316_v25, %v315_v23 }
 0x1a4   : > { %521 = vpush %v317_v27  ;;  %v335_v28 = vrot.slane %v334_v26, 1 }
 0x1a6   : > { %v336_v29 = vadd.f32 %v335_v28, %v334_v26 }
 0x1a8   : > { %523 = vpush %v336_v29 }
 0x1d5   : > { %s522_s5 = spop %521 }
 0x1d6   : > { %v319_v31 = vstv %s522_s5 }
 0x1d7   : > { %v320_v32 = vadd.f32 %v319_v31, %v304_v30 }
 0x1d9   : > { %322 = vst.msk [vmem:[#allocation2] sm:$0x1] %vm321_vm5, %v320_v32  ;;  %s524_s6 = spop %523 }
 0x1da   : > { %v338_v34 = vstv %s524_s6 }
 0x1db   : > { %v339_v35 = vadd.f32 %v338_v34, %v323_v33 }
 0x1dd   : > { %340 = vst.msk [vmem:[#allocation3] sm:$0x1] %vm321_vm5, %v339_v35 }
 0x1de PF: > { %p500_p3 = scmp.ne.s32.totalorder %s643_s12, 1 }
 0x1df   : > { %v658_v37 = vmov (!%p500_p3), 0   ;;  %s501_s7 = sld [smem:[#allocation5 + $0x2]] (!%p500_p3)  ;;  %s502_s8 = sld [smem:[#allocation5 + $0x3]] (!%p500_p3)  ;;  %v373_v50 = vlaneseq (!%p500_p3)  ;;  %v353_v53 = vstv (!%p500_p3), %s726_s25  ;;  %v347_v54 = vld [vmem:[#allocation4] sm:$0x3] (!%p500_p3)  ;;  %vm393_vm6 = vcmask (!%p500_p3), 24576  }
 0x1e0   : > { %344 = sbr.rel (%p500_p3) target bundleno = 647 (0x287), region = 48  ;;  %v355_v36 = vld [vmem:[#allocation2] sm:$0x1] (!%p500_p3)  ;;  %577 = vset.pattern.permute.xlu0 (!%p500_p3), %v658_v37  ;;  %s348_s9 = sld [smem:[#allocation5]] (!%p500_p3)  ;;  %v354_v56 = vadd.f32 (!%p500_p3), %v353_v53, %v347_v54 }
 0x1e1   : > { %v356_v38 = vmul.f32 (!%p500_p3), 0.25, %v355_v36  ;;  %v374_v51 = vshrl.u32 (!%p500_p3), %v373_v50, 7 }
 0x1e3   : > { %v359_v41 = vmul.f32 (!%p500_p3), %v356_v38, %v356_v38  ;;  %v375_v52 = vsub.s32 (!%p500_p3), 0, %v374_v51 }
 0x1e4   : > { %v357_v39 = vld [vmem:[#allocation3] sm:$0x1] (!%p500_p3) }
 0x1e5   : > { %v358_v40 = vmul.f32 (!%p500_p3), 0.25, %v357_v39  ;;  %v363_v44 = vstv (!%p500_p3), %s501_s7  ;;  %v366_v47 = vstv (!%p500_p3), %s502_s8 }
 0x1e6   : > { %v351_v61 = vstv (!%p500_p3), %s348_s9 }
 0x1e7   : > { %v360_v42 = vsub.f32 %v358_v40, %v359_v41  ;;  %v352_v63 = vadd.f32 %v351_v61, %v347_v54 }
 0x1e9   : > { %v361_v43 = vadd.f32 1e-05, %v360_v42 }
 0x1eb   : > { %578 = vrsqrt.f32 %v361_v43 }
 0x1f5   : > { %v579_v45 = vpop.eup %578 }
 0x1f6   : > { %v364_v46 = vmul.f32 %v579_v45, %v363_v44 }
 0x1f8   : > { %370 = vperm.xlu0 %577, %v364_v46   ;;  %v365_v48 = vmul.f32 %v364_v46, %v356_v38 }
 0x1fa   : > { %v367_v49 = vsub.f32 %v366_v47, %v365_v48 }
 0x1fc   : > { %380 = vperm.xlu0 %577, %v367_v49  }
 0x277   : > { %v371_v55 = vpop.permute.xlu0 %370 }
 0x278   : > { %v376_v57 = vrot.slane %v371_v55, %v375_v52 }
 0x27a   : > { %v377_v59 = vmul.f32 %v376_v57, %v354_v56 }
 0x27b   : > { %v381_v58 = vpop.permute.xlu0 %380 }
 0x27c   : > { %v386_v60 = vrot.slane %v381_v58, %v375_v52 }
 0x27e   : > { %v387_v62 = vadd.f32 %v386_v60, %v377_v59 }
 0x280   : > { %v388_v0 = vmax.f32 %v387_v62, 0.0 }
 0x282   : > { %v390_v1 = vrot.slane %v388_v0, 1 }
 0x284   : > { %v392_v2 = vadd.f32 %v390_v1, %v352_v63 }
 0x286   : > { %394 = vst.msk [vmem:[#allocation8] sm:$0x1] %vm393_vm6, %v392_v2 }
 0x287 PF: > { %p743_p4 = scmp.eq.s32.totalorder %s488_s15, 1  ;;  %s659_s11 = smov [#allocation8]  }
 0x288   : > { %s409_s12 = sshll.u32 %s659_s11, 4  ;;  %s410_s12 = int_to_ptr.vmem [resolvable:$true] %s409_s12 }
 0x289   : > { %s595_s18 = scalar_lea.vmem %s410_s12, 16  ;;  %s601_s19 = scalar_lea.vmem %s410_s12, 32 }
 0x28a   : > { %p596_p5 = scmp.ne.s32.totalorder %s410_s12, %s595_s18  ;;  %p602_p8 = scmp.lt.s32.totalorder %s410_s12, %s410_s12 }
 0x28b   : > { %p603_p9 = scmp.lt.s32.totalorder %s601_s19, %s595_s18 }
 0x28c   : > { %p597_p6 = pnand %p596_p5, %p743_p4 }
 0x28d   : > { %p604_p10 = por %p603_p9, %p602_p8 }
 0x28e   : > { %p598_p7 = pneg %p597_p6 }
 0x290   : > { %p605_p11 = pnand %p604_p10, %p598_p7 }
 0x292   : > { %608 = shalt.err (!%p605_p11)
}
 0x293   : > { %s609_s21 = scalar_lea.hbm %s780_s3, 16 }
 0x294   : > { %p610_p12 = scmp.ne.s32.totalorder %s780_s3, %s609_s21  ;;  %p615_p1 = scmp.lt.u32.totalorder %s609_s21, %s780_s3 }
 0x296   : > { %p611_p13 = pnand %p610_p12, %p743_p4 }
 0x298   : > { %p612_p0 = pneg %p611_p13 }
 0x29a   : > { %p617_p2 = pnand %p615_p1, %p612_p0 }
 0x29c   : > { %620 = shalt.err (!%p617_p2)
}
 0x29d   : > { %530 = dma.vmem_to_hbm [thread:$0]  (%p743_p4), %s410_s12, 16, %s780_s3, [#allocation6]  }
 0x29e PF: > { %p544_p3 = scmp.ge.s32.totalorder %s651_s14, 2  ;;  %p545_p5 = scmp.eq.s32.totalorder %s489_s16, 1 }
 0x2a0   : > { %p538_p6 = pnand %p545_p5, %p544_p3 }
 0x2a2   : > { %638 = dma.done.wait (!%p538_p6), [#allocation6], 16  }
 0x2a3   : > { %640 = vsyncadd (!%p538_p6), [#allocation6], 4294967280  ;;  %s17_s14 = sadd.s32 1, %s651_s14   ;;  %s784_s12 = smov %s647_s13 }
 0x2a4   : > { %p14_p7 = scmp.ge.s32.totalorder %s17_s14, 4   ;;  %s785_s13 = smov %s787_s17 }
 0x2a6   :  { %16 = sbr.rel (!%p14_p7) target bundleno = 4 (0x4), region = 86 }
 0x2ad   :  { %426 = vsyncpa [#allocation6], 1 }
 0x2ae   :  { %428 = vsyncpa [#allocation6 + $0x1], 1 }
 0x2af   :  { %429 = vsyncpa [#allocation7], 1 }
 0x2b0   :  { %431 = vsyncpa [#allocation7 + $0x1], 1 }

</bundles_post_ra>
